<compile_context>
chip_gen: v5e
topology: v5e:2x2
jax: 0.10.0
libtpu: 0.0.40
codegen_flags: <defaults>
</compile_context>

<pallas_src>
import functools
import math

import jax
import jax.numpy as jnp
from jax import lax
from jax.experimental import pallas as pl
from jax.experimental.pallas import tpu as pltpu


_FLT_MAX = float(jnp.finfo(jnp.float32).max)


def _round_up(x, m):
  return ((x + m - 1) // m) * m


@functools.lru_cache(maxsize=None)
def _device_budget():
  """Returns (block element budget, vmem_limit_bytes) sized per TPU generation."""
  cap = 64 * 1024 * 1024                     # conservative default (v7x-class VMEM)
  try:
    fn = getattr(pltpu, "get_tpu_info", None)
    if fn is not None:
      c = getattr(fn(), "vmem_capacity_bytes", None)
      if c:
        cap = int(c)
  except Exception:
    pass
  if cap >= 128 * 1024 * 1024:               # v5e / v6e: room for ~2 MiB f32 blocks
    return 512 * 1024, 64 * 1024 * 1024
  # v7x (64 MiB) or unknown: ~1 MiB f32 input blocks.  With double-buffered
  # in/out plus ~5-6x block-size f32 temporaries this stays well under 32 MiB.
  return 256 * 1024, min(cap // 2, 32 * 1024 * 1024)


def _choose_blocks(rows, s, unit, budget):
  """Pick (c_blk, s_blk): c_blk a multiple of `unit` (hence of tile_size and 8),
  s_blk either the full lane extent or a multiple of 128, targeting ~`budget`
  elements per block.  Caller guarantees rows >= unit."""
  if s <= 128 or s * unit <= budget:
    s_blk = s                                           # full lane extent (always legal)
  else:
    s_blk = min(4096, (s // 128) * 128)                 # multiple of 128, <= s
    while s_blk > 128 and s_blk * unit > budget:
      s_blk -= 128
  c_blk = (max(budget // max(s_blk, 1), unit) // unit) * unit
  c_blk = max(unit, min(c_blk, (rows // unit) * unit))
  return c_blk, s_blk


def _bfp_kernel(x_ref, o_ref, *, tile_size, m_bits, valid_rows, mask_rows):
  """Quantize one (c_blk, s_blk) tile; every run of tile_size consecutive rows
  (independently at each lane position) shares one exponent."""
  x = x_ref[...].astype(jnp.float32)                    # (c_blk, s_blk)
  c_blk, s_blk = x.shape
  g = c_blk // tile_size

  abs_x = jnp.abs(x)
  is_finite = abs_x <= _FLT_MAX                         # False for +-Inf and NaN
  masked_abs = jnp.where(is_finite, abs_x, 0.0)
  if mask_rows:
    # Ragged quantization axis: rows >= valid_rows in the last row-block hold
    # out-of-bounds garbage that must not contribute to the group max.
    row0 = pl.program_id(1) * c_blk
    rid = row0 + lax.broadcasted_iota(jnp.int32, (c_blk, s_blk), 0)
    masked_abs = jnp.where(rid < valid_rows, masked_abs, 0.0)

  xg = x.reshape(g, tile_size, s_blk)                   # sublane-only split (no copy)
  grp_max = jnp.max(masked_abs.reshape(g, tile_size, s_blk), axis=1, keepdims=True)

  # Shared exponent = biased exponent field of the per-group max |x|
  # (identical to the max over per-element exponent fields, specials masked).
  shared = (pltpu.bitcast(grp_max, jnp.uint32) >> jnp.uint32(23)).astype(jnp.int32)
  # Clamp so scale / inv_scale remain normal f32.  Only groups whose max |x| is
  # below 2^(m_bits-127) ~= 2^-120 are affected; their exact scale would be
  # subnormal, which the TPU flushes to zero anyway.
  shared = jnp.maximum(shared, m_bits)

  # scale = 2^(shared-127+1-m_bits), inv_scale = 1/scale, built by assembling the
  # exponent field directly (exact, no EUP exp2, no overflow).
  scale = pltpu.bitcast(
      (shared + (1 - m_bits)).astype(jnp.uint32) << jnp.uint32(23), jnp.float32)
  inv_scale = pltpu.bitcast(
      ((253 + m_bits) - shared).astype(jnp.uint32) << jnp.uint32(23), jnp.float32)
  max_v = scale * jnp.float32((1 << m_bits) - 1)        # == 2^(shared-126) - scale

  q = jnp.round(xg * inv_scale) * scale                 # round half to even; exact pow2 scaling
  q = jnp.minimum(jnp.maximum(q, -max_v), max_v)
  q = jnp.where(is_finite.reshape(g, tile_size, s_blk), q, xg)   # Inf/NaN passthrough
  o_ref[...] = q.reshape(c_blk, s_blk).astype(o_ref.dtype)


def bfp_quantize(x, bitwidth=16, tile_size=8, axis=1, round_mode='round_even',
                 epsilon=2.0 ** -23):
  """Pallas TPU BFP quantization; returns an array with x's shape and dtype."""
  if round_mode != 'round_even':
    # TODO(synk): 'round_away' / stochastic rounding modes not implemented.
    raise NotImplementedError(round_mode)
  if not (10 <= int(bitwidth) <= 32):
    raise ValueError(f"bitwidth must be in [10, 32], got {bitwidth}")
  if not jnp.issubdtype(x.dtype, jnp.floating):
    raise TypeError(f"BFP quantization requires a floating dtype, got {x.dtype}")
  del epsilon   # shared exponent comes straight from the IEEE exponent bits

  orig_dtype = x.dtype
  orig_shape = x.shape
  if x.dtype not in (jnp.float32, jnp.bfloat16, jnp.float16):
    x = x.astype(jnp.float32)          # e.g. f64 -> compute in f32, cast back at the end

  m_bits = int(bitwidth) - 9           # 1 sign + 8 shared-exponent bits
  tile_size = int(tile_size)
  ndim = x.ndim
  ax = axis % ndim
  B = math.prod(orig_shape[:ax])
  C = orig_shape[ax]
  S = math.prod(orig_shape[ax + 1:])
  if B * C * S == 0:
    return x.astype(orig_dtype)

  # Zero-copy layout.  Groups are tile_size consecutive elements along `axis` at
  # fixed leading/trailing indices.  When C is a multiple of tile_size the
  # leading dims fold into the row axis (group boundaries never cross them),
  # giving a few large row blocks instead of one tiny slab per batch element.
  if C % tile_size == 0:
    nB, R = 1, B * C
  else:
    nB, R = B, C
  x3 = x.reshape(nB, R, S)

  unit = (tile_size * 8) // math.gcd(tile_size, 8)   # row-block granularity
  budget, vmem_limit = _device_budget()

  pad_rows = 0
  if R < unit:                                       # tiny quantization axis only
    pad_rows = unit - R
    x3 = jnp.pad(x3, ((0, 0), (0, pad_rows), (0, 0)))
  R_pad = R + pad_rows

  c_blk, s_blk = _choose_blocks(R_pad, S, unit, budget)
  # v7x has 2 TensorCores: make sure a 'parallel' axis has >= 2 grid steps.
  if nB * pl.cdiv(R_pad, c_blk) * pl.cdiv(S, s_blk) < 2 and R_pad >= 2 * unit:
    c_blk = min(max(unit, _round_up(pl.cdiv(R_pad, 2), unit)),
                (R_pad // unit) * unit)

  # Ragged tail handled in-kernel (no wrapper pad / post-slice -> no extra HBM
  # passes).  Masking is only needed when garbage rows of a partial last
  # row-block can share a group with valid rows, i.e. R % tile_size != 0.
  mask_rows = (pad_rows == 0) and (R % tile_size != 0)

  grid = (nB, pl.cdiv(R_pad, c_blk), pl.cdiv(S, s_blk))
  out = pl.pallas_call(
      functools.partial(_bfp_kernel, tile_size=tile_size, m_bits=m_bits,
                        valid_rows=R, mask_rows=mask_rows),
      out_shape=jax.ShapeDtypeStruct((nB, R_pad, S), x3.dtype),
      grid_spec=pltpu.PrefetchScalarGridSpec(
          num_scalar_prefetch=0,
          grid=grid,
          in_specs=[pl.BlockSpec((None, c_blk, s_blk), lambda b, i, j: (b, i, j))],
          out_specs=pl.BlockSpec((None, c_blk, s_blk), lambda b, i, j: (b, i, j)),
      ),
      compiler_params=pltpu.CompilerParams(
          dimension_semantics=("parallel", "parallel", "parallel"),
          vmem_limit_bytes=int(vmem_limit)),
  )(x3)

  if pad_rows:
    out = out[:, :R, :]
  out = out.reshape(orig_shape)
  if out.dtype != orig_dtype:
    out = out.astype(orig_dtype)
  return out


class BFPQuantizer:
  """JAX/Pallas counterpart of pytorch_nndct's BFPQuantizer (quantize_to_bfp)."""

  def __init__(self, bitwidth, axis, round_mode='round_even', tile_size=8,
               is_prime=False, memory_format='channels_first',
               epsilon=2.0 ** -23):
    if is_prime:
      # TODO(synk): quantize_to_bfp_prime variant not implemented.
      raise NotImplementedError("is_prime=True")
    self.bitwidth = bitwidth
    self.axis = axis
    self.round_mode = round_mode
    self.tile_size = tile_size
    self.memory_format = memory_format   # informational; `axis` is explicit
    self.epsilon = epsilon

  def __call__(self, x):
    return bfp_quantize(x, self.bitwidth, self.tile_size, self.axis,
                        self.round_mode, self.epsilon)

  forward = __call__


def _bfp_reference(x, bitwidth, tile_size, axis):
  """Pure-JAX (XLA, no Pallas) reference with identical semantics, for validation."""
  m_bits = int(bitwidth) - 9
  ax = axis % x.ndim
  orig_dtype = x.dtype
  xm = jnp.moveaxis(x.astype(jnp.float32), ax, 0)
  C = xm.shape[0]
  rest = xm.shape[1:]
  Cp = _round_up(C, tile_size)
  xf = xm.reshape(C, -1)
  if Cp != C:
    xf = jnp.pad(xf, ((0, Cp - C), (0, 0)))
  xg = xf.reshape(Cp // tile_size, tile_size, -1)
  abs_x = jnp.abs(xg)
  finite = abs_x <= _FLT_MAX
  gmax = jnp.max(jnp.where(finite, abs_x, 0.0), axis=1, keepdims=True)
  shared = (lax.bitcast_convert_type(gmax, jnp.uint32) >> jnp.uint32(23)).astype(jnp.int32)
  shared = jnp.maximum(shared, m_bits)
  scale = lax.bitcast_convert_type(
      (shared + (1 - m_bits)).astype(jnp.uint32) << jnp.uint32(23), jnp.float32)
  inv_scale = lax.bitcast_convert_type(
      ((253 + m_bits) - shared).astype(jnp.uint32) << jnp.uint32(23), jnp.float32)
  max_v = scale * jnp.float32((1 << m_bits) - 1)
  q = jnp.round(xg * inv_scale) * scale
  q = jnp.clip(q, -max_v, max_v)
  q = jnp.where(finite, q, xg)
  q = q.reshape(Cp, -1)[:C].reshape((C,) + rest)
  return jnp.moveaxis(q, 0, ax).astype(orig_dtype)


def _bfp_equal(a, b):
  a32 = jnp.asarray(a).astype(jnp.float32)
  b32 = jnp.asarray(b).astype(jnp.float32)
  same = (a32 == b32) | (jnp.isnan(a32) & jnp.isnan(b32))
  return bool(jnp.all(same))


if __name__ == "__main__":
  quant = BFPQuantizer(bitwidth=16, axis=1, round_mode='round_even', tile_size=8)
  key = jax.random.PRNGKey(0)
  k1, k2, k3, k4 = jax.random.split(key, 4)

  # 1) channels_first activation, channel count a multiple of tile_size
  #    (batch is folded into the row axis -> large blocks, zero-copy).
  x1 = jax.random.normal(k1, (2, 16, 8, 8), dtype=jnp.float32) * 3.0
  y1 = jax.block_until_ready(quant(x1))
  assert y1.shape == x1.shape and y1.dtype == x1.dtype
  assert _bfp_equal(y1, _bfp_reference(x1, 16, 8, 1)), "mismatch: aligned f32"

  # 2) ragged channel count (C % tile_size != 0) -> in-kernel row masking,
  #    no wrapper pad / slice.
  x2 = jax.random.normal(k2, (2, 12, 5, 7), dtype=jnp.float32)
  y2 = jax.block_until_ready(quant(x2))
  assert y2.shape == x2.shape and y2.dtype == x2.dtype
  assert _bfp_equal(y2, _bfp_reference(x2, 16, 8, 1)), "mismatch: ragged"

  # 3) bf16 activations stay bf16 in HBM (upcast to f32 only inside VMEM).
  x3 = (jax.random.normal(k3, (2, 16, 4, 8), dtype=jnp.float32) * 0.5
        ).astype(jnp.bfloat16)
  y3 = jax.block_until_ready(quant(x3))
  assert y3.shape == x3.shape and y3.dtype == jnp.bfloat16
  assert _bfp_equal(y3, _bfp_reference(x3, 16, 8, 1)), "mismatch: bf16"

  # 4) special values: Inf/NaN passthrough, all-zero group, tiny / subnormal groups.
  x4 = jax.random.normal(k4, (1, 8, 4, 4), dtype=jnp.float32)
  x4 = x4.at[0, 0, 0, 0].set(jnp.inf).at[0, 1, 0, 0].set(-jnp.inf)
  x4 = x4.at[0, 2, 1, 0].set(jnp.nan)
  x4 = x4.at[0, :, 3, 3].set(0.0)          # all-zero group -> exactly 0
  x4 = x4.at[0, :, 0, 1].set(1e-37)        # tiny-normal group (clamped-scale path)
  x4 = x4.at[0, :, 1, 2].set(1e-40)        # subnormal group (flushes to zero)
  y4 = jax.block_until_ready(quant(x4))
  assert _bfp_equal(y4, _bfp_reference(x4, 16, 8, 1)), "mismatch: specials"
  assert bool(jnp.isinf(y4[0, 0, 0, 0])) and bool(jnp.isnan(y4[0, 2, 1, 0]))

  print("KERNEL_OK")
</pallas_src>

<mosaic_0001>
module attributes {stable_mosaic.version = 11 : i64} {
  func.func @_bfp_kernel(%arg0: i32, %arg1: i32, %arg2: i32, %arg3: memref<1x16x64xf32, #tpu.memory_space<vmem>>, %arg4: memref<1x16x64xf32, #tpu.memory_space<vmem>>) attributes {dimension_semantics = [#tpu.dimension_semantics<parallel>, #tpu.dimension_semantics<parallel>, #tpu.dimension_semantics<parallel>], iteration_bounds = array<i64: 1, 2, 1>, scalar_prefetch = 0 : i64, scratch_operands = 0 : i64, tpu.core_type = #tpu.core_type<tc>, window_params = [{transform_indices = @transform_0, window_bounds = array<i64: 1, 16, 64>}, {transform_indices = @transform_1, window_bounds = array<i64: 1, 16, 64>}]} {
    %c0 = arith.constant 0 : index
    %c0_0 = arith.constant 0 : index
    %c0_1 = arith.constant 0 : index
    %0 = vector.load %arg3[%c0, %c0_0, %c0_1] : memref<1x16x64xf32, #tpu.memory_space<vmem>>, vector<1x16x64xf32>
    %1 = vector.shape_cast %0 : vector<1x16x64xf32> to vector<16x64xf32>
    %2 = math.absf %1 : vector<16x64xf32>
    %cst = arith.constant 3.40282347E+38 : f32
    %3 = vector.broadcast %cst : f32 to vector<16x64xf32>
    %4 = arith.cmpf ole, %2, %3 : vector<16x64xf32>
    %cst_2 = arith.constant 0.000000e+00 : f32
    %5 = vector.broadcast %cst_2 : f32 to vector<16x64xf32>
    %6 = arith.select %4, %2, %5 : vector<16x64xi1>, vector<16x64xf32>
    %7 = vector.shape_cast %1 : vector<16x64xf32> to vector<2x8x64xf32>
    %8 = vector.shape_cast %6 : vector<16x64xf32> to vector<2x8x64xf32>
    %cst_3 = arith.constant dense<0xFF800000> : vector<2x64xf32>
    %9 = vector.multi_reduction <maximumf>, %8, %cst_3 [1] : vector<2x8x64xf32> to vector<2x64xf32>
    %10 = vector.shape_cast %9 : vector<2x64xf32> to vector<2x1x64xf32>
    %11 = tpu.bitcast %10 : vector<2x1x64xf32> -> vector<2x1x64xi32>
    %c23_i32 = arith.constant 23 : i32
    %12 = vector.broadcast %c23_i32 : i32 to vector<2x1x64xi32>
    %13 = arith.shrui %11, %12 : vector<2x1x64xi32>
    %c7_i32 = arith.constant 7 : i32
    %14 = vector.broadcast %c7_i32 : i32 to vector<2x1x64xi32>
    %15 = arith.maxsi %13, %14 : vector<2x1x64xi32>
    %c-6_i32 = arith.constant -6 : i32
    %16 = vector.broadcast %c-6_i32 : i32 to vector<2x1x64xi32>
    %17 = arith.addi %15, %16 : vector<2x1x64xi32>
    %c23_i32_4 = arith.constant 23 : i32
    %18 = vector.broadcast %c23_i32_4 : i32 to vector<2x1x64xi32>
    %19 = arith.shli %17, %18 : vector<2x1x64xi32>
    %20 = tpu.bitcast %19 : vector<2x1x64xi32> -> vector<2x1x64xf32>
    %c260_i32 = arith.constant 260 : i32
    %21 = vector.broadcast %c260_i32 : i32 to vector<2x1x64xi32>
    %22 = arith.subi %21, %15 : vector<2x1x64xi32>
    %c23_i32_5 = arith.constant 23 : i32
    %23 = vector.broadcast %c23_i32_5 : i32 to vector<2x1x64xi32>
    %24 = arith.shli %22, %23 : vector<2x1x64xi32>
    %25 = tpu.bitcast %24 : vector<2x1x64xi32> -> vector<2x1x64xf32>
    %cst_6 = arith.constant 1.270000e+02 : f32
    %26 = vector.broadcast %cst_6 : f32 to vector<2x1x64xf32>
    %27 = arith.mulf %20, %26 : vector<2x1x64xf32>
    %28 = vector.broadcast %25 : vector<2x1x64xf32> to vector<2x8x64xf32>
    %29 = arith.mulf %7, %28 : vector<2x8x64xf32>
    %30 = math.roundeven %29 : vector<2x8x64xf32>
    %31 = vector.broadcast %20 : vector<2x1x64xf32> to vector<2x8x64xf32>
    %32 = arith.mulf %30, %31 : vector<2x8x64xf32>
    %cst_7 = arith.constant 0.000000e+00 : f32
    %33 = vector.broadcast %cst_7 : f32 to vector<2x1x64xf32>
    %34 = arith.subf %33, %27 : vector<2x1x64xf32>
    %35 = vector.broadcast %34 : vector<2x1x64xf32> to vector<2x8x64xf32>
    %36 = arith.maximumf %32, %35 : vector<2x8x64xf32>
    %37 = vector.broadcast %27 : vector<2x1x64xf32> to vector<2x8x64xf32>
    %38 = arith.minimumf %36, %37 : vector<2x8x64xf32>
    %39 = vector.shape_cast %4 : vector<16x64xi1> to vector<2x8x64xi1>
    %40 = arith.select %39, %38, %7 : vector<2x8x64xi1>, vector<2x8x64xf32>
    %41 = vector.shape_cast %40 : vector<2x8x64xf32> to vector<16x64xf32>
    %c0_8 = arith.constant 0 : index
    %c0_9 = arith.constant 0 : index
    %c0_10 = arith.constant 0 : index
    %42 = vector.load %arg4[%c0_8, %c0_9, %c0_10] : memref<1x16x64xf32, #tpu.memory_space<vmem>>, vector<1x16x64xf32>
    %43 = vector.shape_cast %42 : vector<1x16x64xf32> to vector<16x64xf32>
    %44 = vector.shape_cast %41 : vector<16x64xf32> to vector<1x16x64xf32>
    tpu.vector_store %arg4[%c0_8, %c0_9, %c0_10], %44 {strides = array<i32>} : memref<1x16x64xf32, #tpu.memory_space<vmem>>, vector<1x16x64xf32>,
    return
  }
  func.func @transform_0(%arg0: i32, %arg1: i32, %arg2: i32) -> (i32, i32, i32) {
    %c0_i32 = arith.constant 0 : i32
    return %arg0, %arg1, %arg2 : i32, i32, i32
  }
  func.func @transform_1(%arg0: i32, %arg1: i32, %arg2: i32) -> (i32, i32, i32) {
    %c0_i32 = arith.constant 0 : i32
    return %arg0, %arg1, %arg2 : i32, i32, i32
  }
}

</mosaic_0001>

<bundles_post_ra>
// kernel: tpu_custom_call.1
= control target key start
LH: loop header
LB: loop body
LE: loop exit
PB: predicated region body
PF: predicated region fallthrough
CT: control target
= control target key end

     0   :  { %6 = vsyncpa [#allocation3], 0  ;;  %s722_s0 = inlined_call_operand.hbm [shape: f32[1,32,64], index: 0, kind: input, shape index: {}]   ;;  %s723_s1 = inlined_call_operand.hbm [shape: f32[1,32,64], index: 1, kind: output, shape index: {}]  }
   0x1   :  { %8 = vsyncpa [#allocation3 + $0x1], 0 }
   0x2   :  { %9 = vsyncpa [#allocation4], 0 }
   0x3   :  { %11 = vsyncpa [#allocation4 + $0x1], 0  ;;  %s568_s6 = smov 0   ;;  %s570_s7 = smov 0  }
   0x4   :  { %s572_s8 = smov 0   ;;  %s574_s9 = smov 0  }
   0x5   :  { %s576_s10 = smov 0   ;;  %s578_s11 = smov 0  }
   0x6 LB: > { %s341_s12 = sadd.s32 4294967295, %s552_s11   ;;  %s342_s13 = sadd.s32 4294967294, %s552_s11   ;;  %s552_s11 = sphi %s578_s11, %s17_s11   ;;  %s548_s10 = sphi %s576_s10, %s736_s10   ;;  %s544_s9 = sphi %s574_s9, %s735_s9   ;;  %s540_s8 = sphi %s572_s8, %s734_s8   ;;  %s536_s7 = sphi %s570_s7, %s733_s7   ;;  %s532_s6 = sphi %s568_s6, %s732_s6  }
   0x7   : > { %s32_s14 = sadd.s32 1, %s548_s10  ;;  %s47_s15 = sadd.s32 1, %s540_s8 }
   0x8   : > { %p34_p0 = scmp.ge.s32.totalorder %s32_s14, 2  ;;  %p54_p1 = scmp.ne.s32.totalorder %s540_s8, %s536_s7 }
   0x9   : > { %p55_p2 = scmp.eq.s32.totalorder %s552_s11, 0  ;;  %p60_p3 = scmp.ne.s32.totalorder %s536_s7, %s532_s6 }
   0xa   : > { %s738_s14 = smov (%p34_p0, %s32_s14), 0  ;;  %p61_p5 = scmp.eq.s32.totalorder %s341_s12, 0 }
   0xb   : > { %p609_p4 = por %p55_p2, %p54_p1  ;;  %s41_s17 = ssub.s32 %s548_s10, %s738_s14 }
   0xc   : > { %p88_p6 = scmp.eq.s32.totalorder %s341_s12, 1  ;;  %p45_p7 = scmp.eq.s32.totalorder %s41_s17, 0 }
   0xd   : > { %p615_p8 = por %p61_p5, %p60_p3  ;;  %p94_p10 = scmp.eq.s32.totalorder %s342_s13, 1 }
   0xe   : > { %p619_p9 = por %p88_p6, %p54_p1  ;;  %p344_p12 = scmp.ge.s32.totalorder %s552_s11, 2 }
   0xf   : > { %s624_s20 = scalar_select %p45_p7, %s540_s8, %s47_s15  }
  0x10   : > { %p626_p11 = por %p94_p10, %p60_p3  ;;  %p386_p13 = scmp.lt.s32.totalorder %s552_s11, 2 }
  0x11   : > { %s114_s22 = sand.u32 1, %s540_s8   ;;  %s356_s24 = sshll.u32 %s548_s10, 4 }
  0x12   : > { %s345_s23 = sshll.u32 %s114_s22, 4  ;;  %s126_s27 = scalar_lea.hbm %s722_s0, %s356_s24 }
  0x13   : > { %s118_s28 = scalar_lea.vmem [#allocation2], %s345_s23  ;;  %s127_s30 = sshll.u32 %s126_s27, 4  ;;  %s128_s30 = int_to_ptr.hbm [resolvable:$true] %s127_s30 }
  0x14   : > { %s129_s29 = sshll.u32 %s118_s28, 4  ;;  %p379_p0 = pnand %p386_p13, %p609_p4  ;;  %s130_s29 = int_to_ptr.vmem [resolvable:$true] %s129_s29 }
  0x15   : > { %p348_p1 = scmp.ge.s32.totalorder %s552_s11, 1  ;;  %s115_s2 = scalar_lea.sflag [#allocation3], %s114_s22 }
  0x16   : > { %s554_s3 = smov 128   ;;  %s555_s4 = smov 8  }
  0x17   : > { %381 = dma.hbm_to_vmem [thread:$0]  (!%p379_p0), %s128_s30, 256, %s130_s29, %s115_s2, %s554_s3, %s554_s3, %s555_s4  }
  0x18   : > { %p137_p2 = scmp.lt.s32.totalorder %s552_s11, 3 }
  0x1a   : > { %p138_p3 = pnand %p348_p1, %p137_p2 }
  0x1b   : > { %s642_s5 = sand.u32 (!%p138_p3), 1, %s536_s7  }
  0x1c   : > { %141 = sbr.rel (%p138_p3) target bundleno = 83 (0x53), region = 24  ;;  %s349_s12 = sshll.u32 (!%p138_p3), %s642_s5, 4 }
  0x1d   : > { %s144_s13 = scalar_lea.sflag (!%p138_p3), [#allocation3], %s642_s5  ;;  %s147_s15 = scalar_lea.vmem (!%p138_p3), [#allocation2], %s349_s12 }
  0x21   : > { %523 = dma.done.wait (%p615_p8), %s144_s13, 256  }
  0x22   : > { %525 = vsyncadd (%p615_p8), %s144_s13, 4294967040  ;;  %v652_v0 = vld [vmem:[%s147_s15] sm:$0xff]  ;;  %v654_v1 = vld [vmem:[%s147_s15 + $0x8] sm:$0xff]  ;;  %vm177_vm0 = vcmask 523264   ;;  %s357_s16 = sshll.u32 %s544_s9, 4  ;;  %s166_s23 = scalar_lea.vmem [#allocation5], %s349_s12 }
  0x23   : > { %v171_v2 = vand.u32 2147483647, %v652_v0  ;;  %v172_v3 = vand.u32 2147483647, %v654_v1  ;;  %s245_s22 = scalar_lea.hbm %s723_s1, %s357_s16  ;;  %s246_s24 = sshll.u32 %s166_s23, 4  ;;  %s247_s24 = int_to_ptr.vmem [resolvable:$true] %s246_s24 }
  0x24   : > { %s248_s25 = sshll.u32 %s245_s22, 4  ;;  %s231_s9 = scalar_lea.sflag [#allocation4], %s642_s5  ;;  %s249_s25 = int_to_ptr.hbm [resolvable:$true] %s248_s25 }
  0x25   : > { %vm658_vm1 = vcmp.le.f32.partialorder %v171_v2, 3.4028235e+38  ;;  %vm662_vm2 = vcmp.le.f32.partialorder %v172_v3, 3.4028235e+38  ;;  %s484_s26 = sshra.s32 %s249_s25, 4  ;;  %s490_s30 = scalar_lea.hbm %s723_s1, 32  ;;  %s485_s26 = int_to_ptr.hbm [resolvable:$true] %s484_s26 }
  0x26   : > { %v175_v6 = vsel %vm658_vm1, %v171_v2, 0.0  ;;  %v176_v7 = vsel %vm662_vm2, %v172_v3, 0.0  ;;  %s486_s27 = scalar_lea.hbm %s485_s26, 16  ;;  %p491_p7 = scmp.lt.s32.totalorder %s485_s26, %s723_s1 }
  0x27   : > { %v178_v8 = vsel %vm177_vm0, %v175_v6, -inf  ;;  %v185_v9 = vsel %vm177_vm0, %v176_v7, -inf  ;;  %p487_p4 = scmp.ne.s32.totalorder %s485_s26, %s486_s27  ;;  %p492_p8 = scmp.lt.s32.totalorder %s490_s30, %s486_s27 }
  0x28   : > { %v179_v10 = vrot.slane %v178_v8, 4  ;;  %v186_v11 = vrot.slane %v185_v9, 4 }
  0x29   : > { %p488_p5 = pnand %p487_p4, %p619_p9  ;;  %p493_p10 = por %p492_p8, %p491_p7 }
  0x2a   : > { %v180_v12 = vmax.f32 %v178_v8, %v179_v10  ;;  %v187_v13 = vmax.f32 %v185_v9, %v186_v11 }
  0x2b   : > { %p489_p6 = pneg %p488_p5 }
  0x2c   : > { %v181_v14 = vrot.slane %v180_v12, 2  ;;  %v188_v15 = vrot.slane %v187_v13, 2 }
  0x2d   : > { %p494_p13 = pnand %p493_p10, %p489_p6 }
  0x2e   : > { %v182_v16 = vmax.f32 %v180_v12, %v181_v14  ;;  %v189_v17 = vmax.f32 %v187_v13, %v188_v15 }
  0x30   : > { %v183_v18 = vrot.slane %v182_v16, 1  ;;  %v190_v19 = vrot.slane %v189_v17, 1 }
  0x32   : > { %v184_v20 = vmax.f32 %v182_v16, %v183_v18  ;;  %v191_v21 = vmax.f32 %v189_v17, %v190_v19 }
  0x34   : > { %v194_v22 = vshrl.u32 %v184_v20, 23  ;;  %v195_v23 = vshrl.u32 %v191_v21, 23 }
  0x36   : > { %vm196_vm3 = vcmp.gt.s32.totalorder %v194_v22, 7  ;;  %vm198_vm4 = vcmp.gt.s32.totalorder %v195_v23, 7 }
  0x37   : > { %v197_v24 = vsel %vm196_vm3, %v194_v22, 7  ;;  %v199_v25 = vsel %vm198_vm4, %v195_v23, 7 }
  0x38   : > { %v206_v26 = vsub.s32 260, %v197_v24  ;;  %v207_v27 = vsub.s32 260, %v199_v25  ;;  %v200_v28 = vadd.s32 4294967290, %v197_v24  ;;  %v201_v30 = vadd.s32 4294967290, %v199_v25 }
  0x3a   : > { %v208_v29 = vshll.u32 %v206_v26, 23  ;;  %v209_v31 = vshll.u32 %v207_v27, 23  ;;  %v202_v34 = vshll.u32 %v200_v28, 23  ;;  %v203_v36 = vshll.u32 %v201_v30, 23 }
  0x3c   : > { %v214_v32 = vmul.f32 %v208_v29, %v652_v0  ;;  %v215_v33 = vmul.f32 %v209_v31, %v654_v1  ;;  %v212_v42 = vmul.f32 127.0, %v202_v34  ;;  %v213_v46 = vmul.f32 127.0, %v203_v36 }
  0x3e   : > { %v360_v35 = vcvt.f32.s32 %v214_v32  ;;  %v358_v37 = vand.u32 2147483647, %v214_v32  ;;  %v368_v38 = vcvt.f32.s32 %v215_v33  ;;  %v363_v40 = vand.u32 2147483648, %v214_v32 }
  0x3f   : > { %v366_v41 = vand.u32 2147483647, %v215_v33  ;;  %v371_v44 = vand.u32 2147483648, %v215_v33  ;;  %v220_v49 = vsub.f32 0.0, %v212_v42  ;;  %v221_v52 = vsub.f32 0.0, %v213_v46 }
  0x40   : > { %v361_v39 = vcvt.s32.f32 %v360_v35  ;;  %v369_v43 = vcvt.s32.f32 %v368_v38  ;;  %vm359_vm5 = vcmp.lt.f32.partialorder %v358_v37, 8388608.0 }
  0x41   : > { %vm367_vm6 = vcmp.lt.f32.partialorder %v366_v41, 8388608.0 }
  0x42   : > { %v362_v45 = vand.u32 2147483647, %v361_v39  ;;  %v370_v47 = vand.u32 2147483647, %v369_v43 }
  0x44   : > { %v364_v48 = vor.u32 %v363_v40, %v362_v45  ;;  %v372_v50 = vor.u32 %v371_v44, %v370_v47 }
  0x46   : > { %v365_v51 = vsel %vm359_vm5, %v364_v48, %v214_v32  ;;  %v373_v54 = vsel %vm367_vm6, %v372_v50, %v215_v33 }
  0x47   : > { %v218_v53 = vmul.f32 %v365_v51, %v202_v34  ;;  %v219_v55 = vmul.f32 %v373_v54, %v203_v36 }
  0x49   : > { %v222_v56 = vmax.f32 %v218_v53, %v220_v49  ;;  %v223_v57 = vmax.f32 %v219_v55, %v221_v52 }
  0x4b   : > { %v224_v58 = vmin.f32 %v222_v56, %v212_v42  ;;  %v225_v59 = vmin.f32 %v223_v57, %v213_v46 }
  0x4d   : > { %v226_v60 = vsel %vm658_vm1, %v224_v58, %v652_v0  ;;  %v227_v61 = vsel %vm662_vm2, %v225_v59, %v654_v1 }
  0x4e   : > { %228 = vst.msk [vmem:[%s166_s23] sm:$0xff] %vm177_vm0, %v226_v60 }
  0x4f   : > { %229 = vst.msk [vmem:[%s166_s23 + $0x8] sm:$0xff] %vm177_vm0, %v227_v61 }
  0x50   : > { %497 = shalt.err (!%p494_p13)
}
  0x51   : > { %s556_s4 = smov 128   ;;  %s557_s5 = smov 8  }
  0x52   : > { %376 = dma.vmem_to_hbm [thread:$0]  (%p619_p9), %s247_s24, 256, %s249_s25, %s231_s9, %s556_s4, %s556_s4, %s557_s5  }
  0x53 PF: > { %s263_s12 = sand.u32 1, %s532_s6   ;;  %p383_p0 = pnand %p344_p12, %p626_p11 }
  0x54   : > { %s264_s13 = scalar_lea.sflag [#allocation4], %s263_s12 }
  0x55   : > { %p384_p1 = pneg %p383_p0 }
  0x57   : > { %527 = dma.done.wait (%p384_p1), %s264_s13, 256  }
  0x58   : > { %529 = vsyncadd (%p384_p1), %s264_s13, 4294967040  ;;  %s17_s11 = sadd.s32 1, %s552_s11   ;;  %s732_s6 = smov %s536_s7 }
  0x59   : > { %p14_p2 = scmp.ge.s32.totalorder %s17_s11, 4   ;;  %s733_s7 = smov %s540_s8 }
  0x5a   : > { %s734_s8 = smov %s624_s20  ;;  %s735_s9 = smov %s548_s10 }
  0x5b   : > { %s736_s10 = smov %s738_s14  ;;  %16 = sbr.rel (!%p14_p2) target bundleno = 6 (0x6), region = 69 }
  0x60   :  { %270 = vsyncpa [#allocation3], 1 }
  0x61   :  { %272 = vsyncpa [#allocation3 + $0x1], 1 }
  0x62   :  { %273 = vsyncpa [#allocation4], 1 }
  0x63   :  { %275 = vsyncpa [#allocation4 + $0x1], 1 }

</bundles_post_ra>
